<compile_context>
chip_gen: v6e
topology: v6e:2x2x1
jax: 0.10.0
libtpu: 0.0.40
codegen_flags: <defaults>
</compile_context>

<pallas_src>
import jax
import jax.numpy as jnp
from jax.experimental import pallas as pl
from jax.experimental.pallas import tpu as pltpu


def _make_se_block_kernel(H, W, HW, Nb, sq):
    L = Nb * HW
    inv_hw = 1.0 / HW

    def kernel(x_ref, masks_ref, w1_ref, b1_ref, w2_ref, b2_ref,
               wr_ref, br_ref, we_ref, be_ref, o_ref):

        def swish(t):
            return t * jax.nn.sigmoid(t)

        def conv3x3(inp, wcol, bias):
            # im2col via XLU lane rolls + hoisted boundary masks (zero padding ==
            # masked taps), one bf16 MXU matmul per conv, BN folded into wcol/bias.
            # TODO(synk): on v5e replace the concat + single big-K matmul with 9
            # accumulating (Cp,Cp)x(Cp,L) matmuls to relieve the single store slot.
            taps = []
            for kh in range(3):
                for kw in range(3):
                    t = kh * 3 + kw
                    d = (kh - 1) * W + (kw - 1)
                    if d == 0:
                        tap = inp                      # centre tap: mask is all-ones
                    else:
                        shifted = pltpu.roll(inp, (-d) % L, axis=1)
                        tap = shifted * masks_ref[pl.ds(t, 1), :]     # (Cp, L) f32
                    taps.append(tap)
            patches = jnp.concatenate(taps, axis=0).astype(jnp.bfloat16)   # (9*Cp, L)
            return swish(jnp.dot(wcol, patches,
                                 preferred_element_type=jnp.float32) + bias)

        y1 = conv3x3(x_ref[...], w1_ref[...], b1_ref[...])       # (Cp, L) f32
        y2 = conv3x3(y1, w2_ref[...], b2_ref[...])               # (Cp, L) f32

        # ---- Squeeze-and-Excite, gate computed at (Cp, 1) per image ----
        # u = Wr^T @ y2 (M=sq is tiny); mean over each image's lanes gives
        # Wr^T @ avgpool(y2) without any (K,1) matvec shapes.
        u = jnp.dot(wr_ref[...], y2, preferred_element_type=jnp.float32)   # (sq, L)
        weT = we_ref[...]                                                   # (Cp, sq)
        br = br_ref[...]                                                    # (sq, 1)
        be = be_ref[...]                                                    # (Cp, 1)

        for n in range(Nb):                       # per-image segmented pool + gate
            lo = n * HW
            y2n = y2[:, lo:lo + HW]                                         # (Cp, HW)
            z = swish(jnp.sum(u[:, lo:lo + HW], axis=1, keepdims=True) * inv_hw
                      + br)                                                 # (sq, 1)
            # expand: sq VPU broadcast-MACs, no MXU, sigmoid only on (Cp, 1)
            s_pre = be
            for j in range(sq):
                s_pre = s_pre + weT[:, j:j + 1] * z[j:j + 1, 0:1]
            s = jax.nn.sigmoid(s_pre)                                       # (Cp, 1)
            # residual (eval: _drop_path identity; normalization=True -> plain add).
            # Re-read x here instead of keeping it live across both convs.
            o_ref[:, pl.ds(lo, HW)] = x_ref[:, pl.ds(lo, HW)] + y2n * s

    return kernel


def se_block_forward(x_nchw, p, *, eps=1e-5, images_per_step=None):
    """x_nchw: (N, C, H, W) float32. Returns (N, C, H, W)."""
    N, C, H, W = x_nchw.shape
    HW = H * W
    Cp = ((C + 7) // 8) * 8            # pad channel dim to the 8-sublane tile
    sq = p['wr'].shape[1]
    Nb = images_per_step if images_per_step is not None else N
    assert N % Nb == 0
    L = Nb * HW                        # lanes per grid step (Nb images)
    f32, bf16 = jnp.float32, jnp.bfloat16

    # ---- BN folded into conv weight/bias; im2col weight layout; bf16 MXU operands ----
    def fold(w, g, b, m, v):
        scale = g[0] * jax.lax.rsqrt(v[0] + eps)                   # (Cout,)
        shift = b[0] - m[0] * scale
        return w * scale[None, None, None, :], shift

    def col_weight(w):                                             # (3,3,Cin,Cout) -> (Cp, 9*Cp) bf16
        cin, cout = w.shape[2], w.shape[3]
        wp = jnp.zeros((3, 3, Cp, Cp), f32).at[:, :, :cin, :cout].set(w)
        return wp.reshape(9 * Cp, Cp).T.astype(bf16)

    def col_bias(b):                                               # (Cout,) -> (Cp, 1) f32
        return jnp.zeros((Cp, 1), f32).at[:b.shape[0], 0].set(b)

    w1f, s1 = fold(p['w1'], p['g1'], p['b1'], p['m1'], p['v1'])
    w2f, s2 = fold(p['w2'], p['g2'], p['b2'], p['m2'], p['v2'])
    w1c, b1c = col_weight(w1f), col_bias(s1)
    w2c, b2c = col_weight(w2f), col_bias(s2)

    wrT = jnp.zeros((sq, Cp), f32).at[:, :C].set(p['wr'].T)        # (sq, Cp)
    brc = p['br'][0][:, None]                                      # (sq, 1)
    weT = jnp.zeros((Cp, sq), f32).at[:C, :].set(p['we'].T)        # (Cp, sq)
    bec = jnp.zeros((Cp, 1), f32).at[:C, 0].set(p['be'][0])        # (Cp, 1)

    # ---- hoisted boundary masks: (16, L), tiled Nb times along lanes ----
    idx = jnp.arange(HW, dtype=jnp.int32)
    hh, ww = idx // W, idx % W
    rows = []
    for kh in range(3):
        for kw in range(3):
            dh, dw = kh - 1, kw - 1
            valid = ((hh + dh >= 0) & (hh + dh < H) &
                     (ww + dw >= 0) & (ww + dw < W))
            rows.append(valid.astype(f32))
    masks = jnp.tile(jnp.stack(rows, axis=0), (1, Nb))             # (9, L)
    masks = jnp.concatenate([masks, jnp.zeros((7, L), f32)], axis=0)   # pad to 16 sublanes

    # ---- data layout: (Cp, N*HW) — channels on sublanes, images packed along lanes ----
    x_flat = x_nchw.reshape(N, C, HW).transpose(1, 0, 2).reshape(C, N * HW)
    xk = jnp.zeros((Cp, N * HW), f32).at[:C, :].set(x_flat)

    kernel = _make_se_block_kernel(H, W, HW, Nb, sq)
    out = pl.pallas_call(
        kernel,
        out_shape=jax.ShapeDtypeStruct((Cp, N * HW), f32),
        grid=(N // Nb,),
        in_specs=[
            pl.BlockSpec((Cp, L), lambda n: (0, n)),          # x: Nb images per step
            pl.BlockSpec((16, L), lambda n: (0, 0)),          # boundary masks (resident)
            pl.BlockSpec((Cp, 9 * Cp), lambda n: (0, 0)),     # conv1 im2col weight (bf16, BN folded)
            pl.BlockSpec((Cp, 1), lambda n: (0, 0)),          # conv1 bias (BN shift)
            pl.BlockSpec((Cp, 9 * Cp), lambda n: (0, 0)),     # conv2 im2col weight (bf16)
            pl.BlockSpec((Cp, 1), lambda n: (0, 0)),          # conv2 bias
            pl.BlockSpec((sq, Cp), lambda n: (0, 0)),         # SE reduce (Wr^T)
            pl.BlockSpec((sq, 1), lambda n: (0, 0)),          # SE reduce bias
            pl.BlockSpec((Cp, sq), lambda n: (0, 0)),         # SE expand (We^T)
            pl.BlockSpec((Cp, 1), lambda n: (0, 0)),          # SE expand bias
        ],
        out_specs=pl.BlockSpec((Cp, L), lambda n: (0, n)),    # lane-dense (last dim = Nb*HW)
        compiler_params=pltpu.CompilerParams(
            dimension_semantics=("parallel",),                # shard grid steps across TCs (v7x)
            vmem_limit_bytes=32 * 1024 * 1024),
    )(xk, masks, w1c, b1c, w2c, b2c, wrT, brc, weT, bec)

    # TODO(synk): for production spatial sizes, tile H into row blocks with a 1-row
    # halo and accumulate the SE pool across tiles (pl.when init/finalize); re-derive
    # tile sizes for v7x's 64 MiB VMEM (~half of a v6e-sized tile) and raise
    # vmem_limit_bytes / pipeline depth on v5e/v6e where 128 MiB is available.
    out = out[:C, :].reshape(C, N, HW).transpose(1, 0, 2).reshape(N, C, H, W)
    return out


def ref_forward(x_nchw, p):
    """Pure-JAX reference (NHWC internally) for validation."""
    x = jnp.transpose(x_nchw, (0, 2, 3, 1))
    dn = ('NHWC', 'HWIO', 'NHWC')
    eps = 1e-5

    def bn(y, g, b, m, v):
        return (y - m[0]) / jnp.sqrt(v[0] + eps) * g[0] + b[0]

    def swish(t):
        return t * jax.nn.sigmoid(t)

    y = jax.lax.conv_general_dilated(x, p['w1'], (1, 1), ((1, 1), (1, 1)),
                                     dimension_numbers=dn)
    y = swish(bn(y, p['g1'], p['b1'], p['m1'], p['v1']))
    y = jax.lax.conv_general_dilated(y, p['w2'], (1, 1), ((1, 1), (1, 1)),
                                     dimension_numbers=dn)
    y = swish(bn(y, p['g2'], p['b2'], p['m2'], p['v2']))
    pooled = jnp.mean(y, axis=(1, 2))
    z = swish(pooled @ p['wr'] + p['br'][0])
    s = jax.nn.sigmoid(z @ p['we'] + p['be'][0])
    y = y * s[:, None, None, :]
    out = x + y
    return jnp.transpose(out, (0, 3, 1, 2))


def make_params(key, in_ch, out_ch, se_ratio):
    sq = int(in_ch * se_ratio)
    ks = jax.random.split(key, 12)
    f32 = jnp.float32
    return {
        # conv weights stored HWIO (3,3,Cin,Cout)
        'w1': 0.3 * jax.random.normal(ks[0], (3, 3, in_ch, out_ch), f32),
        'w2': 0.3 * jax.random.normal(ks[1], (3, 3, out_ch, out_ch), f32),
        # BatchNorm (eval-mode) params, shape (1, C)
        'g1': 1.0 + 0.1 * jax.random.normal(ks[2], (1, out_ch), f32),
        'b1': 0.1 * jax.random.normal(ks[3], (1, out_ch), f32),
        'm1': 0.1 * jax.random.normal(ks[4], (1, out_ch), f32),
        'v1': jax.random.uniform(ks[5], (1, out_ch), f32, 0.5, 1.5),
        'g2': 1.0 + 0.1 * jax.random.normal(ks[6], (1, out_ch), f32),
        'b2': 0.1 * jax.random.normal(ks[7], (1, out_ch), f32),
        'm2': 0.1 * jax.random.normal(ks[8], (1, out_ch), f32),
        'v2': jax.random.uniform(ks[9], (1, out_ch), f32, 0.5, 1.5),
        # SE 1x1 convs as matmuls: reduce (Cout->sq), expand (sq->Cout)
        'wr': 0.3 * jax.random.normal(ks[10], (out_ch, sq), f32),
        'br': jnp.zeros((1, sq), f32),
        'we': 0.3 * jax.random.normal(ks[11], (sq, out_ch), f32),
        'be': jnp.zeros((1, out_ch), f32),
    }


if __name__ == "__main__":
    # SEBlock(in_channels=4, out_channels=4, kernel_size=3, stride=1,
    #         se_ratio=0.5, drop_connect_rate=0.2) in eval mode.
    N, C, H, W = 2, 4, 16, 16
    key = jax.random.PRNGKey(0)
    kx, kp = jax.random.split(key)
    x = jax.random.normal(kx, (N, C, H, W), jnp.float32)
    params = make_params(kp, in_ch=C, out_ch=C, se_ratio=0.5)

    out = jax.block_until_ready(se_block_forward(x, params))
    ref = jax.block_until_ready(ref_forward(x, params))

    assert out.shape == (N, C, H, W)
    err = jnp.max(jnp.abs(out - ref))
    # Conv matmul operands are bf16 on the MXU (f32 accumulation), so tolerance is
    # relaxed vs the pure-f32 reference.
    assert jnp.allclose(out, ref, atol=5e-2, rtol=5e-2), f"max abs diff {err}"
    # TODO(synk): training-mode alpha_dropout (_drop_path) not implemented; eval-mode forward only.
    print("KERNEL_OK")
</pallas_src>

<mosaic_0001>
module attributes {stable_mosaic.version = 11 : i64} {
  func.func @kernel(%arg0: i32, %arg1: memref<8x512xf32, #tpu.memory_space<vmem>>, %arg2: memref<16x512xf32, #tpu.memory_space<vmem>>, %arg3: memref<8x72xbf16, #tpu.memory_space<vmem>>, %arg4: memref<8x1xf32, #tpu.memory_space<vmem>>, %arg5: memref<8x72xbf16, #tpu.memory_space<vmem>>, %arg6: memref<8x1xf32, #tpu.memory_space<vmem>>, %arg7: memref<2x8xf32, #tpu.memory_space<vmem>>, %arg8: memref<2x1xf32, #tpu.memory_space<vmem>>, %arg9: memref<8x2xf32, #tpu.memory_space<vmem>>, %arg10: memref<8x1xf32, #tpu.memory_space<vmem>>, %arg11: memref<8x512xf32, #tpu.memory_space<vmem>>) attributes {dimension_semantics = [#tpu.dimension_semantics<parallel>], iteration_bounds = array<i64: 1>, scalar_prefetch = 0 : i64, scratch_operands = 0 : i64, tpu.core_type = #tpu.core_type<tc>, window_params = [{transform_indices = @transform_0, window_bounds = array<i64: 8, 512>}, {pipeline_mode = #tpu.pipeline_mode<synchronous>, transform_indices = @transform_1, window_bounds = array<i64: 16, 512>}, {pipeline_mode = #tpu.pipeline_mode<synchronous>, transform_indices = @transform_2, window_bounds = array<i64: 8, 72>}, {pipeline_mode = #tpu.pipeline_mode<synchronous>, transform_indices = @transform_3, window_bounds = array<i64: 8, 1>}, {pipeline_mode = #tpu.pipeline_mode<synchronous>, transform_indices = @transform_4, window_bounds = array<i64: 8, 72>}, {pipeline_mode = #tpu.pipeline_mode<synchronous>, transform_indices = @transform_5, window_bounds = array<i64: 8, 1>}, {pipeline_mode = #tpu.pipeline_mode<synchronous>, transform_indices = @transform_6, window_bounds = array<i64: 2, 8>}, {pipeline_mode = #tpu.pipeline_mode<synchronous>, transform_indices = @transform_7, window_bounds = array<i64: 2, 1>}, {pipeline_mode = #tpu.pipeline_mode<synchronous>, transform_indices = @transform_8, window_bounds = array<i64: 8, 2>}, {pipeline_mode = #tpu.pipeline_mode<synchronous>, transform_indices = @transform_9, window_bounds = array<i64: 8, 1>}, {transform_indices = @transform_10, window_bounds = array<i64: 8, 512>}]} {
    %c0 = arith.constant 0 : index
    %c0_0 = arith.constant 0 : index
    %0 = vector.load %arg1[%c0, %c0_0] : memref<8x512xf32, #tpu.memory_space<vmem>>, vector<8x512xf32>
    %c0_1 = arith.constant 0 : index
    %c0_2 = arith.constant 0 : index
    %1 = vector.load %arg3[%c0_1, %c0_2] : memref<8x72xbf16, #tpu.memory_space<vmem>>, vector<8x72xbf16>
    %c0_3 = arith.constant 0 : index
    %c0_4 = arith.constant 0 : index
    %2 = vector.load %arg4[%c0_3, %c0_4] : memref<8x1xf32, #tpu.memory_space<vmem>>, vector<8x1xf32>
    %c17_i32 = arith.constant 17 : i32
    %3 = tpu.dynamic_rotate %0 by %c17_i32 dim 1 : vector<8x512xf32>, i32 -> vector<8x512xf32>
    %c0_5 = arith.constant 0 : index
    %c0_6 = arith.constant 0 : index
    %4 = vector.load %arg2[%c0_5, %c0_6] : memref<16x512xf32, #tpu.memory_space<vmem>>, vector<1x512xf32>
    %5 = vector.broadcast %4 : vector<1x512xf32> to vector<8x512xf32>
    %6 = arith.mulf %3, %5 : vector<8x512xf32>
    %c16_i32 = arith.constant 16 : i32
    %7 = tpu.dynamic_rotate %0 by %c16_i32 dim 1 : vector<8x512xf32>, i32 -> vector<8x512xf32>
    %c1 = arith.constant 1 : index
    %c0_7 = arith.constant 0 : index
    %8 = vector.load %arg2[%c1, %c0_7] : memref<16x512xf32, #tpu.memory_space<vmem>>, vector<1x512xf32>
    %9 = vector.broadcast %8 : vector<1x512xf32> to vector<8x512xf32>
    %10 = arith.mulf %7, %9 : vector<8x512xf32>
    %c15_i32 = arith.constant 15 : i32
    %11 = tpu.dynamic_rotate %0 by %c15_i32 dim 1 : vector<8x512xf32>, i32 -> vector<8x512xf32>
    %c2 = arith.constant 2 : index
    %c0_8 = arith.constant 0 : index
    %12 = vector.load %arg2[%c2, %c0_8] : memref<16x512xf32, #tpu.memory_space<vmem>>, vector<1x512xf32>
    %13 = vector.broadcast %12 : vector<1x512xf32> to vector<8x512xf32>
    %14 = arith.mulf %11, %13 : vector<8x512xf32>
    %c1_i32 = arith.constant 1 : i32
    %15 = tpu.dynamic_rotate %0 by %c1_i32 dim 1 : vector<8x512xf32>, i32 -> vector<8x512xf32>
    %c3 = arith.constant 3 : index
    %c0_9 = arith.constant 0 : index
    %16 = vector.load %arg2[%c3, %c0_9] : memref<16x512xf32, #tpu.memory_space<vmem>>, vector<1x512xf32>
    %17 = vector.broadcast %16 : vector<1x512xf32> to vector<8x512xf32>
    %18 = arith.mulf %15, %17 : vector<8x512xf32>
    %c511_i32 = arith.constant 511 : i32
    %19 = tpu.dynamic_rotate %0 by %c511_i32 dim 1 : vector<8x512xf32>, i32 -> vector<8x512xf32>
    %c5 = arith.constant 5 : index
    %c0_10 = arith.constant 0 : index
    %20 = vector.load %arg2[%c5, %c0_10] : memref<16x512xf32, #tpu.memory_space<vmem>>, vector<1x512xf32>
    %21 = vector.broadcast %20 : vector<1x512xf32> to vector<8x512xf32>
    %22 = arith.mulf %19, %21 : vector<8x512xf32>
    %c497_i32 = arith.constant 497 : i32
    %23 = tpu.dynamic_rotate %0 by %c497_i32 dim 1 : vector<8x512xf32>, i32 -> vector<8x512xf32>
    %c6 = arith.constant 6 : index
    %c0_11 = arith.constant 0 : index
    %24 = vector.load %arg2[%c6, %c0_11] : memref<16x512xf32, #tpu.memory_space<vmem>>, vector<1x512xf32>
    %25 = vector.broadcast %24 : vector<1x512xf32> to vector<8x512xf32>
    %26 = arith.mulf %23, %25 : vector<8x512xf32>
    %c496_i32 = arith.constant 496 : i32
    %27 = tpu.dynamic_rotate %0 by %c496_i32 dim 1 : vector<8x512xf32>, i32 -> vector<8x512xf32>
    %c7 = arith.constant 7 : index
    %c0_12 = arith.constant 0 : index
    %28 = vector.load %arg2[%c7, %c0_12] : memref<16x512xf32, #tpu.memory_space<vmem>>, vector<1x512xf32>
    %29 = vector.broadcast %28 : vector<1x512xf32> to vector<8x512xf32>
    %30 = arith.mulf %27, %29 : vector<8x512xf32>
    %c495_i32 = arith.constant 495 : i32
    %31 = tpu.dynamic_rotate %0 by %c495_i32 dim 1 : vector<8x512xf32>, i32 -> vector<8x512xf32>
    %c8 = arith.constant 8 : index
    %c0_13 = arith.constant 0 : index
    %32 = vector.load %arg2[%c8, %c0_13] : memref<16x512xf32, #tpu.memory_space<vmem>>, vector<1x512xf32>
    %33 = vector.broadcast %32 : vector<1x512xf32> to vector<8x512xf32>
    %34 = arith.mulf %31, %33 : vector<8x512xf32>
    %35 = tpu.concatenate %6, %10, %14, %18, %0, %22, %26, %30, %34 in 0 : vector<8x512xf32>, vector<8x512xf32>, vector<8x512xf32>, vector<8x512xf32>, vector<8x512xf32>, vector<8x512xf32>, vector<8x512xf32>, vector<8x512xf32>, vector<8x512xf32> -> vector<72x512xf32>
    %36 = arith.truncf %35 : vector<72x512xf32> to vector<72x512xbf16>
    %cst = arith.constant dense<0.000000e+00> : vector<8x512xf32>
    %37 = tpu.matmul %1, %36, %cst {dimension_numbers = #tpu.dot_dimension_numbers<[1], [0], [0], [1], [0, 0, 1, 1], [], []>} : vector<8x72xbf16>, vector<72x512xbf16>, vector<8x512xf32> -> vector<8x512xf32>
    %38 = vector.broadcast %2 : vector<8x1xf32> to vector<8x512xf32>
    %39 = arith.addf %37, %38 : vector<8x512xf32>
    %40 = arith.negf %39 : vector<8x512xf32>
    %41 = math.exp %40 : vector<8x512xf32>
    %cst_14 = arith.constant 1.000000e+00 : f32
    %42 = vector.broadcast %cst_14 : f32 to vector<8x512xf32>
    %43 = arith.addf %42, %41 : vector<8x512xf32>
    %44 = arith.divf %42, %43 : vector<8x512xf32>
    %45 = arith.mulf %39, %44 : vector<8x512xf32>
    %c0_15 = arith.constant 0 : index
    %c0_16 = arith.constant 0 : index
    %46 = vector.load %arg5[%c0_15, %c0_16] : memref<8x72xbf16, #tpu.memory_space<vmem>>, vector<8x72xbf16>
    %c0_17 = arith.constant 0 : index
    %c0_18 = arith.constant 0 : index
    %47 = vector.load %arg6[%c0_17, %c0_18] : memref<8x1xf32, #tpu.memory_space<vmem>>, vector<8x1xf32>
    %c17_i32_19 = arith.constant 17 : i32
    %48 = tpu.dynamic_rotate %45 by %c17_i32_19 dim 1 : vector<8x512xf32>, i32 -> vector<8x512xf32>
    %c0_20 = arith.constant 0 : index
    %c0_21 = arith.constant 0 : index
    %49 = vector.load %arg2[%c0_20, %c0_21] : memref<16x512xf32, #tpu.memory_space<vmem>>, vector<1x512xf32>
    %50 = vector.broadcast %49 : vector<1x512xf32> to vector<8x512xf32>
    %51 = arith.mulf %48, %50 : vector<8x512xf32>
    %c16_i32_22 = arith.constant 16 : i32
    %52 = tpu.dynamic_rotate %45 by %c16_i32_22 dim 1 : vector<8x512xf32>, i32 -> vector<8x512xf32>
    %c1_23 = arith.constant 1 : index
    %c0_24 = arith.constant 0 : index
    %53 = vector.load %arg2[%c1_23, %c0_24] : memref<16x512xf32, #tpu.memory_space<vmem>>, vector<1x512xf32>
    %54 = vector.broadcast %53 : vector<1x512xf32> to vector<8x512xf32>
    %55 = arith.mulf %52, %54 : vector<8x512xf32>
    %c15_i32_25 = arith.constant 15 : i32
    %56 = tpu.dynamic_rotate %45 by %c15_i32_25 dim 1 : vector<8x512xf32>, i32 -> vector<8x512xf32>
    %c2_26 = arith.constant 2 : index
    %c0_27 = arith.constant 0 : index
    %57 = vector.load %arg2[%c2_26, %c0_27] : memref<16x512xf32, #tpu.memory_space<vmem>>, vector<1x512xf32>
    %58 = vector.broadcast %57 : vector<1x512xf32> to vector<8x512xf32>
    %59 = arith.mulf %56, %58 : vector<8x512xf32>
    %c1_i32_28 = arith.constant 1 : i32
    %60 = tpu.dynamic_rotate %45 by %c1_i32_28 dim 1 : vector<8x512xf32>, i32 -> vector<8x512xf32>
    %c3_29 = arith.constant 3 : index
    %c0_30 = arith.constant 0 : index
    %61 = vector.load %arg2[%c3_29, %c0_30] : memref<16x512xf32, #tpu.memory_space<vmem>>, vector<1x512xf32>
    %62 = vector.broadcast %61 : vector<1x512xf32> to vector<8x512xf32>
    %63 = arith.mulf %60, %62 : vector<8x512xf32>
    %c511_i32_31 = arith.constant 511 : i32
    %64 = tpu.dynamic_rotate %45 by %c511_i32_31 dim 1 : vector<8x512xf32>, i32 -> vector<8x512xf32>
    %c5_32 = arith.constant 5 : index
    %c0_33 = arith.constant 0 : index
    %65 = vector.load %arg2[%c5_32, %c0_33] : memref<16x512xf32, #tpu.memory_space<vmem>>, vector<1x512xf32>
    %66 = vector.broadcast %65 : vector<1x512xf32> to vector<8x512xf32>
    %67 = arith.mulf %64, %66 : vector<8x512xf32>
    %c497_i32_34 = arith.constant 497 : i32
    %68 = tpu.dynamic_rotate %45 by %c497_i32_34 dim 1 : vector<8x512xf32>, i32 -> vector<8x512xf32>
    %c6_35 = arith.constant 6 : index
    %c0_36 = arith.constant 0 : index
    %69 = vector.load %arg2[%c6_35, %c0_36] : memref<16x512xf32, #tpu.memory_space<vmem>>, vector<1x512xf32>
    %70 = vector.broadcast %69 : vector<1x512xf32> to vector<8x512xf32>
    %71 = arith.mulf %68, %70 : vector<8x512xf32>
    %c496_i32_37 = arith.constant 496 : i32
    %72 = tpu.dynamic_rotate %45 by %c496_i32_37 dim 1 : vector<8x512xf32>, i32 -> vector<8x512xf32>
    %c7_38 = arith.constant 7 : index
    %c0_39 = arith.constant 0 : index
    %73 = vector.load %arg2[%c7_38, %c0_39] : memref<16x512xf32, #tpu.memory_space<vmem>>, vector<1x512xf32>
    %74 = vector.broadcast %73 : vector<1x512xf32> to vector<8x512xf32>
    %75 = arith.mulf %72, %74 : vector<8x512xf32>
    %c495_i32_40 = arith.constant 495 : i32
    %76 = tpu.dynamic_rotate %45 by %c495_i32_40 dim 1 : vector<8x512xf32>, i32 -> vector<8x512xf32>
    %c8_41 = arith.constant 8 : index
    %c0_42 = arith.constant 0 : index
    %77 = vector.load %arg2[%c8_41, %c0_42] : memref<16x512xf32, #tpu.memory_space<vmem>>, vector<1x512xf32>
    %78 = vector.broadcast %77 : vector<1x512xf32> to vector<8x512xf32>
    %79 = arith.mulf %76, %78 : vector<8x512xf32>
    %80 = tpu.concatenate %51, %55, %59, %63, %45, %67, %71, %75, %79 in 0 : vector<8x512xf32>, vector<8x512xf32>, vector<8x512xf32>, vector<8x512xf32>, vector<8x512xf32>, vector<8x512xf32>, vector<8x512xf32>, vector<8x512xf32>, vector<8x512xf32> -> vector<72x512xf32>
    %81 = arith.truncf %80 : vector<72x512xf32> to vector<72x512xbf16>
    %cst_43 = arith.constant dense<0.000000e+00> : vector<8x512xf32>
    %82 = tpu.matmul %46, %81, %cst_43 {dimension_numbers = #tpu.dot_dimension_numbers<[1], [0], [0], [1], [0, 0, 1, 1], [], []>} : vector<8x72xbf16>, vector<72x512xbf16>, vector<8x512xf32> -> vector<8x512xf32>
    %83 = vector.broadcast %47 : vector<8x1xf32> to vector<8x512xf32>
    %84 = arith.addf %82, %83 : vector<8x512xf32>
    %85 = arith.negf %84 : vector<8x512xf32>
    %86 = math.exp %85 : vector<8x512xf32>
    %cst_44 = arith.constant 1.000000e+00 : f32
    %87 = vector.broadcast %cst_44 : f32 to vector<8x512xf32>
    %88 = arith.addf %87, %86 : vector<8x512xf32>
    %89 = arith.divf %87, %88 : vector<8x512xf32>
    %90 = arith.mulf %84, %89 : vector<8x512xf32>
    %c0_45 = arith.constant 0 : index
    %c0_46 = arith.constant 0 : index
    %91 = vector.load %arg7[%c0_45, %c0_46] : memref<2x8xf32, #tpu.memory_space<vmem>>, vector<2x8xf32>
    %cst_47 = arith.constant dense<0.000000e+00> : vector<2x512xf32>
    %92 = tpu.matmul %91, %90, %cst_47 {dimension_numbers = #tpu.dot_dimension_numbers<[1], [0], [0], [1], [0, 0, 1, 1], [], []>} : vector<2x8xf32>, vector<8x512xf32>, vector<2x512xf32> -> vector<2x512xf32>
    %c0_48 = arith.constant 0 : index
    %c0_49 = arith.constant 0 : index
    %93 = vector.load %arg9[%c0_48, %c0_49] : memref<8x2xf32, #tpu.memory_space<vmem>>, vector<8x2xf32>
    %c0_50 = arith.constant 0 : index
    %c0_51 = arith.constant 0 : index
    %94 = vector.load %arg8[%c0_50, %c0_51] : memref<2x1xf32, #tpu.memory_space<vmem>>, vector<2x1xf32>
    %c0_52 = arith.constant 0 : index
    %c0_53 = arith.constant 0 : index
    %95 = vector.load %arg10[%c0_52, %c0_53] : memref<8x1xf32, #tpu.memory_space<vmem>>, vector<8x1xf32>
    %96 = vector.extract_strided_slice %90 {offsets = [0, 0], sizes = [8, 256], strides = [1, 1]} : vector<8x512xf32> to vector<8x256xf32>
    %97 = vector.extract_strided_slice %92 {offsets = [0, 0], sizes = [2, 256], strides = [1, 1]} : vector<2x512xf32> to vector<2x256xf32>
    %cst_54 = arith.constant dense<0.000000e+00> : vector<2xf32>
    %98 = vector.multi_reduction <add>, %97, %cst_54 [1] : vector<2x256xf32> to vector<2xf32>
    %99 = vector.shape_cast %98 : vector<2xf32> to vector<2x1xf32>
    %cst_55 = arith.constant 3.906250e-03 : f32
    %100 = vector.broadcast %cst_55 : f32 to vector<2x1xf32>
    %101 = arith.mulf %99, %100 : vector<2x1xf32>
    %102 = arith.addf %101, %94 : vector<2x1xf32>
    %103 = arith.negf %102 : vector<2x1xf32>
    %104 = math.exp %103 : vector<2x1xf32>
    %cst_56 = arith.constant 1.000000e+00 : f32
    %105 = vector.broadcast %cst_56 : f32 to vector<2x1xf32>
    %106 = arith.addf %105, %104 : vector<2x1xf32>
    %107 = arith.divf %105, %106 : vector<2x1xf32>
    %108 = arith.mulf %102, %107 : vector<2x1xf32>
    %109 = vector.extract_strided_slice %93 {offsets = [0, 0], sizes = [8, 1], strides = [1, 1]} : vector<8x2xf32> to vector<8x1xf32>
    %110 = vector.extract_strided_slice %108 {offsets = [0, 0], sizes = [1, 1], strides = [1, 1]} : vector<2x1xf32> to vector<1x1xf32>
    %111 = vector.broadcast %110 : vector<1x1xf32> to vector<8x1xf32>
    %112 = arith.mulf %109, %111 : vector<8x1xf32>
    %113 = arith.addf %95, %112 : vector<8x1xf32>
    %114 = vector.extract_strided_slice %93 {offsets = [0, 1], sizes = [8, 1], strides = [1, 1]} : vector<8x2xf32> to vector<8x1xf32>
    %115 = vector.extract_strided_slice %108 {offsets = [1, 0], sizes = [1, 1], strides = [1, 1]} : vector<2x1xf32> to vector<1x1xf32>
    %116 = vector.broadcast %115 : vector<1x1xf32> to vector<8x1xf32>
    %117 = arith.mulf %114, %116 : vector<8x1xf32>
    %118 = arith.addf %113, %117 : vector<8x1xf32>
    %119 = arith.negf %118 : vector<8x1xf32>
    %120 = math.exp %119 : vector<8x1xf32>
    %cst_57 = arith.constant 1.000000e+00 : f32
    %121 = vector.broadcast %cst_57 : f32 to vector<8x1xf32>
    %122 = arith.addf %121, %120 : vector<8x1xf32>
    %123 = arith.divf %121, %122 : vector<8x1xf32>
    %c0_58 = arith.constant 0 : index
    %c0_59 = arith.constant 0 : index
    %124 = vector.load %arg1[%c0_58, %c0_59] : memref<8x512xf32, #tpu.memory_space<vmem>>, vector<8x256xf32>
    %125 = vector.broadcast %123 : vector<8x1xf32> to vector<8x256xf32>
    %126 = arith.mulf %96, %125 : vector<8x256xf32>
    %127 = arith.addf %124, %126 : vector<8x256xf32>
    %c0_60 = arith.constant 0 : index
    %c0_61 = arith.constant 0 : index
    %128 = vector.load %arg11[%c0_60, %c0_61] : memref<8x512xf32, #tpu.memory_space<vmem>>, vector<8x256xf32>
    tpu.vector_store %arg11[%c0_60, %c0_61], %127 {strides = array<i32>} : memref<8x512xf32, #tpu.memory_space<vmem>>, vector<8x256xf32>,
    %129 = vector.extract_strided_slice %90 {offsets = [0, 256], sizes = [8, 256], strides = [1, 1]} : vector<8x512xf32> to vector<8x256xf32>
    %130 = vector.extract_strided_slice %92 {offsets = [0, 256], sizes = [2, 256], strides = [1, 1]} : vector<2x512xf32> to vector<2x256xf32>
    %cst_62 = arith.constant dense<0.000000e+00> : vector<2xf32>
    %131 = vector.multi_reduction <add>, %130, %cst_62 [1] : vector<2x256xf32> to vector<2xf32>
    %132 = vector.shape_cast %131 : vector<2xf32> to vector<2x1xf32>
    %cst_63 = arith.constant 3.906250e-03 : f32
    %133 = vector.broadcast %cst_63 : f32 to vector<2x1xf32>
    %134 = arith.mulf %132, %133 : vector<2x1xf32>
    %135 = arith.addf %134, %94 : vector<2x1xf32>
    %136 = arith.negf %135 : vector<2x1xf32>
    %137 = math.exp %136 : vector<2x1xf32>
    %cst_64 = arith.constant 1.000000e+00 : f32
    %138 = vector.broadcast %cst_64 : f32 to vector<2x1xf32>
    %139 = arith.addf %138, %137 : vector<2x1xf32>
    %140 = arith.divf %138, %139 : vector<2x1xf32>
    %141 = arith.mulf %135, %140 : vector<2x1xf32>
    %142 = vector.extract_strided_slice %93 {offsets = [0, 0], sizes = [8, 1], strides = [1, 1]} : vector<8x2xf32> to vector<8x1xf32>
    %143 = vector.extract_strided_slice %141 {offsets = [0, 0], sizes = [1, 1], strides = [1, 1]} : vector<2x1xf32> to vector<1x1xf32>
    %144 = vector.broadcast %143 : vector<1x1xf32> to vector<8x1xf32>
    %145 = arith.mulf %142, %144 : vector<8x1xf32>
    %146 = arith.addf %95, %145 : vector<8x1xf32>
    %147 = vector.extract_strided_slice %93 {offsets = [0, 1], sizes = [8, 1], strides = [1, 1]} : vector<8x2xf32> to vector<8x1xf32>
    %148 = vector.extract_strided_slice %141 {offsets = [1, 0], sizes = [1, 1], strides = [1, 1]} : vector<2x1xf32> to vector<1x1xf32>
    %149 = vector.broadcast %148 : vector<1x1xf32> to vector<8x1xf32>
    %150 = arith.mulf %147, %149 : vector<8x1xf32>
    %151 = arith.addf %146, %150 : vector<8x1xf32>
    %152 = arith.negf %151 : vector<8x1xf32>
    %153 = math.exp %152 : vector<8x1xf32>
    %cst_65 = arith.constant 1.000000e+00 : f32
    %154 = vector.broadcast %cst_65 : f32 to vector<8x1xf32>
    %155 = arith.addf %154, %153 : vector<8x1xf32>
    %156 = arith.divf %154, %155 : vector<8x1xf32>
    %c0_66 = arith.constant 0 : index
    %c256 = arith.constant 256 : index
    %157 = vector.load %arg1[%c0_66, %c256] : memref<8x512xf32, #tpu.memory_space<vmem>>, vector<8x256xf32>
    %158 = vector.broadcast %156 : vector<8x1xf32> to vector<8x256xf32>
    %159 = arith.mulf %129, %158 : vector<8x256xf32>
    %160 = arith.addf %157, %159 : vector<8x256xf32>
    %c0_67 = arith.constant 0 : index
    %c256_68 = arith.constant 256 : index
    %161 = vector.load %arg11[%c0_67, %c256_68] : memref<8x512xf32, #tpu.memory_space<vmem>>, vector<8x256xf32>
    tpu.vector_store %arg11[%c0_67, %c256_68], %160 {strides = array<i32>} : memref<8x512xf32, #tpu.memory_space<vmem>>, vector<8x256xf32>,
    return
  }
  func.func @transform_0(%arg0: i32) -> (i32, i32) {
    %c0_i32 = arith.constant 0 : i32
    %c0_i32_0 = arith.constant 0 : i32
    return %c0_i32, %arg0 : i32, i32
  }
  func.func @transform_1(%arg0: i32) -> (i32, i32) {
    %c0_i32 = arith.constant 0 : i32
    %c0_i32_0 = arith.constant 0 : i32
    %c0_i32_1 = arith.constant 0 : i32
    return %c0_i32, %c0_i32_0 : i32, i32
  }
  func.func @transform_2(%arg0: i32) -> (i32, i32) {
    %c0_i32 = arith.constant 0 : i32
    %c0_i32_0 = arith.constant 0 : i32
    %c0_i32_1 = arith.constant 0 : i32
    return %c0_i32, %c0_i32_0 : i32, i32
  }
  func.func @transform_3(%arg0: i32) -> (i32, i32) {
    %c0_i32 = arith.constant 0 : i32
    %c0_i32_0 = arith.constant 0 : i32
    %c0_i32_1 = arith.constant 0 : i32
    return %c0_i32, %c0_i32_0 : i32, i32
  }
  func.func @transform_4(%arg0: i32) -> (i32, i32) {
    %c0_i32 = arith.constant 0 : i32
    %c0_i32_0 = arith.constant 0 : i32
    %c0_i32_1 = arith.constant 0 : i32
    return %c0_i32, %c0_i32_0 : i32, i32
  }
  func.func @transform_5(%arg0: i32) -> (i32, i32) {
    %c0_i32 = arith.constant 0 : i32
    %c0_i32_0 = arith.constant 0 : i32
    %c0_i32_1 = arith.constant 0 : i32
    return %c0_i32, %c0_i32_0 : i32, i32
  }
  func.func @transform_6(%arg0: i32) -> (i32, i32) {
    %c0_i32 = arith.constant 0 : i32
    %c0_i32_0 = arith.constant 0 : i32
    %c0_i32_1 = arith.constant 0 : i32
    return %c0_i32, %c0_i32_0 : i32, i32
  }
  func.func @transform_7(%arg0: i32) -> (i32, i32) {
    %c0_i32 = arith.constant 0 : i32
    %c0_i32_0 = arith.constant 0 : i32
    %c0_i32_1 = arith.constant 0 : i32
    return %c0_i32, %c0_i32_0 : i32, i32
  }
  func.func @transform_8(%arg0: i32) -> (i32, i32) {
    %c0_i32 = arith.constant 0 : i32
    %c0_i32_0 = arith.constant 0 : i32
    %c0_i32_1 = arith.constant 0 : i32
    return %c0_i32, %c0_i32_0 : i32, i32
  }
  func.func @transform_9(%arg0: i32) -> (i32, i32) {
    %c0_i32 = arith.constant 0 : i32
    %c0_i32_0 = arith.constant 0 : i32
    %c0_i32_1 = arith.constant 0 : i32
    return %c0_i32, %c0_i32_0 : i32, i32
  }
  func.func @transform_10(%arg0: i32) -> (i32, i32) {
    %c0_i32 = arith.constant 0 : i32
    %c0_i32_0 = arith.constant 0 : i32
    return %c0_i32, %arg0 : i32, i32
  }
}

</mosaic_0001>

<bundles_post_ra>
// kernel: tpu_custom_call.1
= control target key start
LH: loop header
LB: loop body
LE: loop exit
PB: predicated region body
PF: predicated region fallthrough
CT: control target
= control target key end

     0   :  { %15 = vsyncpa [#allocation3], 0  ;;  %s1835_s0 = inlined_call_operand.vmem [shape: f32[8,512], index: 0, kind: input, shape index: {}]   ;;  %s1836_s1 = inlined_call_operand.hbm [shape: f32[16,512], index: 1, kind: input, shape index: {}]   ;;  %s1837_s2 = inlined_call_operand.vmem [shape: bf16[8,72], index: 2, kind: input, shape index: {}]   ;;  %s1838_s3 = inlined_call_operand.vmem [shape: f32[8,1], index: 3, kind: input, shape index: {}]   ;;  %s1839_s4 = inlined_call_operand.vmem [shape: bf16[8,72], index: 4, kind: input, shape index: {}]   ;;  %s1840_s5 = inlined_call_operand.vmem [shape: f32[8,1], index: 5, kind: input, shape index: {}]   ;;  %s1841_s6 = inlined_call_operand.vmem [shape: f32[2,8], index: 6, kind: input, shape index: {}]   ;;  %s1842_s7 = inlined_call_operand.vmem [shape: f32[2,1], index: 7, kind: input, shape index: {}]   ;;  %s1843_s8 = inlined_call_operand.vmem [shape: f32[8,2], index: 8, kind: input, shape index: {}]   ;;  %s1844_s9 = inlined_call_operand.vmem [shape: f32[8,1], index: 9, kind: input, shape index: {}]   ;;  %s1845_s10 = inlined_call_operand.hbm [shape: f32[8,512], index: 10, kind: output, shape index: {}]  }
   0x1   :  { %16 = vsyncpa [#allocation4], 0  ;;  %s1212_s13 = smov [#allocation2]  }
   0x2   :  { %s24_s14 = sshll.u32 %s1212_s13, 4  ;;  %s25_s14 = int_to_ptr.vmem [resolvable:$true] %s24_s14 }
   0x3   :  { %s1176_s15 = scalar_lea.vmem %s25_s14, 1024  ;;  %p1181_p1 = scmp.lt.s32.totalorder %s25_s14, %s25_s14 }
   0x4   :  { %p1177_p0 = scmp.ne.s32.totalorder %s25_s14, %s1176_s15  ;;  %p1182_p2 = scmp.lt.s32.totalorder %s1176_s15, %s1176_s15 }
   0x6   :  { %p1183_p3 = por %p1182_p2, %p1181_p1 }
   0x8   :  { %p1184_p4 = pnand %p1183_p3, %p1177_p0 }
   0xa   :  { %1187 = shalt.err (!%p1184_p4)
}
   0xb   :  { %s1213_s16 = smov 512   ;;  %s1214_s17 = smov 32  }
   0xc   :  { %30 = dma.hbm_to_vmem [thread:$0]  %s1836_s1, 1024, %s25_s14, [#allocation3], %s1213_s16, %s1213_s16, %s1214_s17  }
   0xd   :  { %1208 = dma.done.wait [#allocation3], 1024  }
   0xe   :  { %1209 = vsyncadd [#allocation3], 4294966272  ;;  %v1287_v0 = vld [vmem:[%s1835_s0 + $0x10] sm:$0xff]  ;;  %v1292_v1 = vld [vmem:[%s1835_s0] sm:$0xff]  ;;  %s1215_s24 = smov 111   ;;  %s1216_s28 = smov 113   ;;  %v65_v6 = vlaneseq }
   0xf   :  { %342 = vrot.lane.b32.xlu1 %v1287_v0, %s1215_s24  ;;  %338 = vrot.lane.b32.xlu0 %v1292_v1, %s1215_s24  ;;  %v1301_v2 = vld [vmem:[%s1835_s0 + $0x18] sm:$0xff]  ;;  %v1306_v3 = vld [vmem:[%s1835_s0 + $0x8] sm:$0xff]  ;;  %s1217_s29 = smov 112   ;;  %s1218_s30 = smov 127   ;;  %v1222_v4 = vmov 0   ;;  %vm407_vm1 = vcmask 1043456  }
  0x10   :  { %s1219_s11 = smov 15   ;;  %s1220_s12 = smov 1   ;;  %452 = vmatprep.mubr.bf16.mxu0 %v1222_v4  ;;  %493 = vmatprep.mubr.bf16.mxu1 %v1222_v4  ;;  %v56_v5 = vld [vmem:[%s1838_s3] sm:$0xff]  ;;  %v75_v7 = vshrl.u32 %v65_v6, 7  ;;  %v1375_v8 = vand.u32 127, %v65_v6  ;;  %vm403_vm9 = vcmask 588800  }
  0x11   :  { %s1221_s13 = smov 17   ;;  %1118 = vset.pattern.permute.xlu0 %v1222_v4  ;;  %1119 = vset.pattern.permute.xlu1 %v1222_v4  ;;  %s1223_s14 = smov 16   ;;  %v352_v13 = vld [vmem:[#allocation2 + $0x20] ss:$8 sm:$0xf]  ;;  %vm811_vm10 = vcmask 64512  }
  0x12   :  { %v1377_v9 = vsub.s32 0, %v75_v7  ;;  %v1379_v10 = vsub.s32 1, %v75_v7  ;;  %v1381_v11 = vsub.s32 2, %v75_v7  ;;  %v1383_v12 = vsub.s32 3, %v75_v7 }
  0x13   :  { %344 = vrot.lane.b32.xlu1 %v1301_v2, %s1215_s24  ;;  %340 = vrot.lane.b32.xlu0 %v1306_v3, %s1215_s24  ;;  %vm346_vm0 = vcmp.lt.s32.totalorder %v1375_v8, 111  ;;  %v312_v40 = vld [vmem:[#allocation2 + $0x7] ss:$8 sm:$0xf]  ;;  %vm306_vm2 = vcmp.lt.s32.totalorder %v1375_v8, 112  ;;  %vm266_vm3 = vcmp.lt.s32.totalorder %v1375_v8, 113 }
  0x14   :  { %v1387_v16 = vrot.slane %v352_v13, %v1381_v11  ;;  %v1390_v17 = vrot.slane %v352_v13, %v1377_v9  ;;  %v1393_v18 = vrot.slane %v352_v13, %v1379_v10  ;;  %v1396_v19 = vrot.slane %v352_v13, %v1383_v12  ;;  %v272_v41 = vld [vmem:[#allocation2 + $0x6] ss:$8 sm:$0xf] }
  0x15   :  { %v1417_v42 = vrot.slane %v272_v41, %v1383_v12  ;;  %v1420_v43 = vrot.slane %v272_v41, %v1379_v10  ;;  %v1425_v47 = vrot.slane %v272_v41, %v1381_v11  ;;  %v1430_v49 = vrot.slane %v312_v40, %v1377_v9 }
  0x16   :  { %v1435_v51 = vrot.slane %v312_v40, %v1383_v12  ;;  %v1438_v52 = vrot.slane %v312_v40, %v1379_v10  ;;  %v1441_v53 = vrot.slane %v312_v40, %v1381_v11  ;;  %v1444_v54 = vrot.slane %v272_v41, %v1377_v9 }
  0x17   :  { %260 = vrot.lane.b32.xlu1 %v1306_v3, %s1216_s28  ;;  %258 = vrot.lane.b32.xlu0 %v1292_v1, %s1216_s28  ;;  %vm226_vm4 = vcmp.lt.s32.totalorder %v1375_v8, 127  ;;  %vm146_vm5 = vcmp.lt.s32.totalorder %v1375_v8, 15  ;;  %vm186_vm6 = vcmp.lt.s32.totalorder %v1375_v8, 1  ;;  %vm67_vm7 = vcmp.lt.s32.totalorder %v1375_v8, 17 }
  0x18   :  { %vm106_vm8 = vcmp.lt.s32.totalorder %v1375_v8, 16  ;;  %v530_v8 = vld [vmem:[%s1839_s4] sm:$0xf]  ;;  %vm960_vm11 = vcmask 1041408  }
  0x1b   :  { %264 = vrot.lane.b32.xlu1 %v1301_v2, %s1216_s28  ;;  %262 = vrot.lane.b32.xlu0 %v1287_v0, %s1216_s28 }
  0x1f   :  { %300 = vrot.lane.b32.xlu1 %v1306_v3, %s1217_s29  ;;  %298 = vrot.lane.b32.xlu0 %v1292_v1, %s1217_s29 }
  0x23   :  { %304 = vrot.lane.b32.xlu1 %v1301_v2, %s1217_s29  ;;  %302 = vrot.lane.b32.xlu0 %v1287_v0, %s1217_s29 }
  0x27   :  { %220 = vrot.lane.b32.xlu1 %v1306_v3, %s1218_s30  ;;  %218 = vrot.lane.b32.xlu0 %v1292_v1, %s1218_s30 }
  0x2b   :  { %224 = vrot.lane.b32.xlu1 %v1301_v2, %s1218_s30  ;;  %222 = vrot.lane.b32.xlu0 %v1287_v0, %s1218_s30 }
  0x2f   :  { %140 = vrot.lane.b32.xlu1 %v1306_v3, %s1219_s11  ;;  %138 = vrot.lane.b32.xlu0 %v1292_v1, %s1219_s11 }
  0x33   :  { %144 = vrot.lane.b32.xlu1 %v1301_v2, %s1219_s11  ;;  %142 = vrot.lane.b32.xlu0 %v1287_v0, %s1219_s11 }
  0x37   :  { %180 = vrot.lane.b32.xlu1 %v1306_v3, %s1220_s12  ;;  %178 = vrot.lane.b32.xlu0 %v1292_v1, %s1220_s12 }
  0x3b   :  { %184 = vrot.lane.b32.xlu1 %v1301_v2, %s1220_s12  ;;  %182 = vrot.lane.b32.xlu0 %v1287_v0, %s1220_s12 }
  0x3f   :  { %59 = vrot.lane.b32.xlu1 %v1306_v3, %s1221_s13  ;;  %57 = vrot.lane.b32.xlu0 %v1292_v1, %s1221_s13 }
  0x43   :  { %63 = vrot.lane.b32.xlu1 %v1301_v2, %s1221_s13  ;;  %61 = vrot.lane.b32.xlu0 %v1287_v0, %s1221_s13 }
  0x47   :  { %100 = vrot.lane.b32.xlu1 %v1306_v3, %s1223_s14  ;;  %98 = vrot.lane.b32.xlu0 %v1292_v1, %s1223_s14 }
  0x4b   :  { %104 = vrot.lane.b32.xlu1 %v1301_v2, %s1223_s14  ;;  %102 = vrot.lane.b32.xlu0 %v1287_v0, %s1223_s14 }
  0x4f   :  { %400 = vperm.xlu0 %1118, %v56_v5  }
  0x81   :  { %v343_v14 = vpop.permute.xlu1 %342  ;;  %v339_v15 = vpop.permute.xlu0 %338 }
  0x85   :  { %v345_v20 = vpop.permute.xlu1 %344  ;;  %v341_v21 = vpop.permute.xlu0 %340 }
  0x86   :  { %v347_v22 = vsel %vm346_vm0, %v343_v14, %v345_v20  ;;  %v350_v23 = vsel %vm346_vm0, %v345_v20, %v339_v15  ;;  %v348_v24 = vsel %vm346_vm0, %v341_v21, %v343_v14  ;;  %v349_v25 = vsel %vm346_vm0, %v339_v15, %v341_v21  ;;  %v232_v15 = vld [vmem:[#allocation2 + $0x5] ss:$8 sm:$0xf] }
  0x87   :  { %v376_v26 = vmul.f32 %v1387_v16, %v347_v22  ;;  %v374_v27 = vmul.f32 %v1390_v17, %v349_v25  ;;  %v375_v28 = vmul.f32 %v1393_v18, %v348_v24  ;;  %v377_v29 = vmul.f32 %v1396_v19, %v350_v23 }
  0x89   :  { %v261_v30 = vpop.permute.xlu1 %260  ;;  %v259_v31 = vpop.permute.xlu0 %258  ;;  %v395_v32 = vpack.c.bf16 %v375_v28, %v375_v28  ;;  %v397_v33 = vpack.c.bf16 %v377_v29, %v377_v29  ;;  %v394_v34 = vpack.c.bf16 %v374_v27, %v374_v27  ;;  %v396_v35 = vpack.c.bf16 %v376_v26, %v376_v26 }
  0x8a   :  { %v269_v56 = vsel %vm266_vm3, %v259_v31, %v261_v30  ;;  %v1466_v26 = vrot.slane %v232_v15, %v1377_v9  ;;  %v1469_v28 = vrot.slane %v232_v15, %v1383_v12 }
  0x8b   :  { %1082 = vmatprep.subr.msk.bf16.mxu0 %vm407_vm1, %v395_v32  ;;  %1084 = vmatprep.subr.msk.bf16.mxu1 %vm407_vm1, %v397_v33  ;;  %v409_v36 = vsel %vm407_vm1, %v394_v34, 0  ;;  %v415_v37 = vsel %vm407_vm1, %v396_v35, 0  ;;  %v294_v20 = vmul.f32 %v1444_v54, %v269_v56  ;;  %v192_v56 = vld [vmem:[#allocation2 + $0x3] ss:$8 sm:$0xf] }
  0x8c   :  { %427 = vmatpush1.bf16.msra.mxu0 %v409_v36  ;;  %468 = vmatpush1.bf16.msra.mxu1 %v415_v37 }
  0x8d   :  { %v265_v38 = vpop.permute.xlu1 %264  ;;  %v263_v39 = vpop.permute.xlu0 %262 }
  0x8e   :  { %v270_v46 = vsel %vm266_vm3, %v265_v38, %v259_v31  ;;  %v268_v48 = vsel %vm266_vm3, %v261_v30, %v263_v39  ;;  %v267_v55 = vsel %vm266_vm3, %v263_v39, %v265_v38  ;;  %v1474_v30 = vrot.slane %v232_v15, %v1379_v10 }
  0x8f   :  { %v297_v57 = vmul.f32 %v1417_v42, %v270_v46  ;;  %v295_v58 = vmul.f32 %v1420_v43, %v268_v48  ;;  %v296_v6 = vmul.f32 %v1425_v47, %v267_v55  ;;  %v1477_v31 = vrot.slane %v232_v15, %v1381_v11  ;;  %v152_v55 = vld [vmem:[#allocation2 + $0x2] ss:$8 sm:$0xf] }
  0x91   :  { %v301_v44 = vpop.permute.xlu1 %300  ;;  %v299_v45 = vpop.permute.xlu0 %298 }
  0x92   :  { %v309_v50 = vsel %vm306_vm2, %v299_v45, %v301_v44 }
  0x93   :  { %v334_v61 = vmul.f32 %v1430_v49, %v309_v50 }
  0x95   :  { %v305_v59 = vpop.permute.xlu1 %304  ;;  %v303_v60 = vpop.permute.xlu0 %302  ;;  %v390_v27 = vpack.c.bf16 %v334_v61, %v294_v20  ;;  %v1527_v20 = vrot.slane %v192_v56, %v1383_v12 }
  0x96   :  { %v310_v62 = vsel %vm306_vm2, %v305_v59, %v299_v45  ;;  %v307_v63 = vsel %vm306_vm2, %v303_v60, %v305_v59  ;;  %v308_v5 = vsel %vm306_vm2, %v301_v44, %v303_v60  ;;  %v1495_v59 = vrot.slane %v152_v55, %v1379_v10 }
  0x97   :  { %v337_v7 = vmul.f32 %v1435_v51, %v310_v62  ;;  %v335_v13 = vmul.f32 %v1438_v52, %v308_v5  ;;  %v336_v14 = vmul.f32 %v1441_v53, %v307_v63  ;;  %v1510_v60 = vrot.slane %v152_v55, %v1383_v12 }
  0x99   :  { %v221_v21 = vpop.permute.xlu1 %220  ;;  %v219_v22 = vpop.permute.xlu0 %218  ;;  %v391_v23 = vpack.c.bf16 %v335_v13, %v295_v58  ;;  %v393_v24 = vpack.c.bf16 %v337_v7, %v297_v57  ;;  %v392_v25 = vpack.c.bf16 %v336_v14, %v296_v6  ;;  %v1517_v6 = vrot.slane %v192_v56, %v1377_v9 }
  0x9a   :  { %v229_v29 = vsel %vm226_vm4, %v219_v22, %v221_v21  ;;  %v1520_v7 = vrot.slane %v192_v56, %v1381_v11 }
  0x9b   :  { %428 = vmatprep.subr.bf16.mxu0 %v391_v23  ;;  %469 = vmatprep.subr.bf16.mxu1 %v393_v24  ;;  %v254_v34 = vmul.f32 %v1466_v26, %v229_v29 }
  0x9c   :  { %429 = vmatpush1.bf16.msra.mxu0 %v390_v27  ;;  %470 = vmatpush1.bf16.msra.mxu1 %v392_v25 }
  0x9d   :  { %v225_v32 = vpop.permute.xlu1 %224  ;;  %v223_v33 = vpop.permute.xlu0 %222  ;;  %v386_v50 = vpack.c.bf16 %v254_v34, %v1292_v1  ;;  %v1504_v1 = vrot.slane %v152_v55, %v1377_v9 }
  0x9e   :  { %v230_v35 = vsel %vm226_vm4, %v225_v32, %v219_v22  ;;  %v227_v36 = vsel %vm226_vm4, %v223_v33, %v225_v32  ;;  %v228_v37 = vsel %vm226_vm4, %v221_v21, %v223_v33 }
  0x9f   :  { %v257_v38 = vmul.f32 %v1469_v28, %v230_v35  ;;  %v255_v39 = vmul.f32 %v1474_v30, %v228_v37  ;;  %v256_v40 = vmul.f32 %v1477_v31, %v227_v36 }
  0xa1   :  { %v141_v41 = vpop.permute.xlu1 %140  ;;  %v139_v44 = vpop.permute.xlu0 %138  ;;  %v387_v45 = vpack.c.bf16 %v255_v39, %v1306_v3  ;;  %v389_v46 = vpack.c.bf16 %v257_v38, %v1301_v2  ;;  %v388_v48 = vpack.c.bf16 %v256_v40, %v1287_v0  ;;  %v1499_v2 = vrot.slane %v192_v56, %v1379_v10 }
  0xa2   :  { %v149_v0 = vsel %vm146_vm5, %v139_v44, %v141_v41  ;;  %v1507_v3 = vrot.slane %v152_v55, %v1381_v11 }
  0xa3   :  { %430 = vmatprep.subr.bf16.mxu0 %v387_v45  ;;  %471 = vmatprep.subr.bf16.mxu1 %v389_v46  ;;  %v175_v13 = vmul.f32 %v1495_v59, %v149_v0  ;;  %v72_v45 = vld [vmem:[#allocation2] ss:$8 sm:$0xf]  ;;  %v112_v46 = vld [vmem:[#allocation2 + $0x1] ss:$8 sm:$0xf] }
  0xa4   :  { %431 = vmatpush1.bf16.msra.mxu0 %v386_v50  ;;  %472 = vmatpush1.bf16.msra.mxu1 %v388_v48  ;;  %v1545_v55 = vrot.slane %v72_v45, %v1379_v10  ;;  %v1549_v56 = vrot.slane %v112_v46, %v1379_v10  ;;  %v1557_v0 = vrot.slane %v72_v45, %v1381_v11 }
  0xa5   :  { %v145_v57 = vpop.permute.xlu1 %144  ;;  %v143_v58 = vpop.permute.xlu0 %142 }
  0xa6   :  { %v150_v63 = vsel %vm146_vm5, %v145_v57, %v139_v44  ;;  %v148_v14 = vsel %vm146_vm5, %v141_v41, %v143_v58  ;;  %v147_v21 = vsel %vm146_vm5, %v143_v58, %v145_v57  ;;  %v1554_v58 = vrot.slane %v72_v45, %v1377_v9 }
  0xa7   :  { %v174_v22 = vmul.f32 %v1504_v1, %v150_v63  ;;  %v176_v27 = vmul.f32 %v1507_v3, %v148_v14  ;;  %v177_v34 = vmul.f32 %v1510_v60, %v147_v21  ;;  %v1567_v14 = vrot.slane %v112_v46, %v1377_v9 }
  0xa9   :  { %v181_v61 = vpop.permute.xlu1 %180  ;;  %v179_v62 = vpop.permute.xlu0 %178 }
  0xaa   :  { %v189_v5 = vsel %vm186_vm6, %v179_v62, %v181_v61 }
  0xab   :  { %v215_v15 = vmul.f32 %v1499_v2, %v189_v5 }
  0xad   :  { %v185_v23 = vpop.permute.xlu1 %184  ;;  %v183_v24 = vpop.permute.xlu0 %182  ;;  %v383_v25 = vpack.c.bf16 %v215_v15, %v175_v13  ;;  %v1570_v15 = vrot.slane %v112_v46, %v1381_v11 }
  0xae   :  { %v190_v29 = vsel %vm186_vm6, %v185_v23, %v179_v62  ;;  %v187_v32 = vsel %vm186_vm6, %v183_v24, %v185_v23  ;;  %v188_v33 = vsel %vm186_vm6, %v181_v61, %v183_v24  ;;  %v1560_v61 = vrot.slane %v72_v45, %v1383_v12  ;;  %v55_v45 = vld [vmem:[%s1837_s2] sm:$0xf] }
  0xaf   :  { %v214_v35 = vmul.f32 %v1517_v6, %v190_v29  ;;  %v216_v36 = vmul.f32 %v1520_v7, %v188_v33  ;;  %v217_v37 = vmul.f32 %v1527_v20, %v187_v32  ;;  %432 = vmatprep.subr.bf16.mxu0 %v383_v25  ;;  %v1577_v24 = vrot.slane %v112_v46, %v1383_v12 }
  0xb1   :  { %v60_v38 = vpop.permute.xlu1 %59  ;;  %v58_v39 = vpop.permute.xlu0 %57  ;;  %v382_v40 = vpack.c.bf16 %v214_v35, %v174_v22  ;;  %v385_v41 = vpack.c.bf16 %v217_v37, %v177_v34  ;;  %v384_v44 = vpack.c.bf16 %v216_v36, %v176_v27 }
  0xb2   :  { %v70_v57 = vsel %vm67_vm7, %v58_v39, %v60_v38 }
  0xb3   :  { %433 = vmatpush1.bf16.msra.mxu0 %v382_v40  ;;  %473 = vmatprep.subr.bf16.mxu1 %v385_v41  ;;  %v95_v21 = vmul.f32 %v1545_v55, %v70_v57 }
  0xb4   :  { %474 = vmatpush1.bf16.msra.mxu1 %v384_v44 }
  0xb5   :  { %v64_v48 = vpop.permute.xlu1 %63  ;;  %v62_v50 = vpop.permute.xlu0 %61 }
  0xb6   :  { %v71_v5 = vsel %vm67_vm7, %v64_v48, %v58_v39  ;;  %v69_v22 = vsel %vm67_vm7, %v60_v38, %v62_v50  ;;  %v68_v25 = vsel %vm67_vm7, %v62_v50, %v64_v48 }
  0xb7   :  { %v94_v27 = vmul.f32 %v1554_v58, %v71_v5  ;;  %v96_v11 = vmul.f32 %v1557_v0, %v69_v22  ;;  %v97_v36 = vmul.f32 %v1560_v61, %v68_v25 }
  0xb9   :  { %v101_v62 = vpop.permute.xlu1 %100  ;;  %v99_v63 = vpop.permute.xlu0 %98 }
  0xba   :  { %v109_v13 = vsel %vm106_vm8, %v99_v63, %v101_v62 }
  0xbb   :  { %v135_v23 = vmul.f32 %v1549_v56, %v109_v13 }
  0xbd   :  { %v105_v29 = vpop.permute.xlu1 %104  ;;  %v103_v32 = vpop.permute.xlu0 %102  ;;  %v379_v33 = vpack.c.bf16 %v135_v23, %v95_v21 }
  0xbe   :  { %v110_v34 = vsel %vm106_vm8, %v105_v29, %v99_v63  ;;  %v107_v35 = vsel %vm106_vm8, %v103_v32, %v105_v29  ;;  %v108_v12 = vsel %vm106_vm8, %v101_v62, %v103_v32 }
  0xbf   :  { %v134_v37 = vmul.f32 %v1567_v14, %v110_v34  ;;  %v136_v38 = vmul.f32 %v1570_v15, %v108_v12  ;;  %v137_v39 = vmul.f32 %v1577_v24, %v107_v35  ;;  %434 = vmatprep.subr.bf16.mxu0 %v379_v33 }
  0xc1   :  { %v378_v40 = vpack.c.bf16 %v134_v37, %v94_v27  ;;  %v381_v41 = vpack.c.bf16 %v137_v39, %v97_v36  ;;  %v380_v44 = vpack.c.bf16 %v136_v38, %v96_v11 }
  0xc3   :  { %435 = vmatpush1.bf16.msra.mxu0 %v378_v40  ;;  %475 = vmatprep.subr.bf16.mxu1 %v381_v41 }
  0xc4   :  { %476 = vmatpush1.bf16.msra.mxu1 %v380_v44 }
  0xc6   :  { %1083 = vmatmul.mubr.msk.bf16.vlgmr.msra.gmra.mxu0 %vm403_vm9, %v55_v45 }
  0xc7   :  { %1085 = vmatmul.mubr.msk.bf16.vlgmr.msra.gmra.mxu1 %vm403_vm9, %v55_v45  ;;  %732 = vmatprep.mubr.bf16.mxu0 %v1222_v4 }
  0xc8   :  { %773 = vmatprep.mubr.bf16.mxu1 %v1222_v4 }
  0xca   :  { %v401_v46 = vpop.permute.xlu0 %400 }
 0x186   :  { %v454_v48 = vpop.f32.mrf.mxu0 }
 0x187   :  { %v455_v50 = vadd.f32 %v454_v48, %v401_v46  ;;  %v495_v57 = vpop.f32.mrf.mxu1 }
 0x188   :  { %v496_v62 = vadd.f32 %v495_v57, %v401_v46  ;;  %v456_v63 = vpop.f32.mrf.mxu0 }
 0x189   :  { %v1086_v5 = vmul.f32 -1.442695, %v455_v50  ;;  %v457_v13 = vadd.f32 %v456_v63, %v401_v46  ;;  %v497_v21 = vpop.f32.mrf.mxu1 }
 0x18a   :  { %v1088_v22 = vmul.f32 -1.442695, %v496_v62  ;;  %v498_v23 = vadd.f32 %v497_v21, %v401_v46  ;;  %v458_v25 = vpop.f32.mrf.mxu0 }
 0x18b   :  { %1120 = vpow2.f32 %v1086_v5  ;;  %v1087_v27 = vmul.f32 -1.442695, %v457_v13  ;;  %v499_v29 = vpop.f32.mrf.mxu1 }
 0x18c   :  { %1122 = vpow2.f32 %v1088_v22  ;;  %v1089_v32 = vmul.f32 -1.442695, %v498_v23  ;;  %v459_v33 = vpop.f32.mrf.mxu0 }
 0x18d   :  { %1124 = vpow2.f32 %v1087_v27  ;;  %v500_v4 = vpop.f32.mrf.mxu1 }
 0x18e   :  { %1126 = vpow2.f32 %v1089_v32 }
 0x198   :  { %v1121_v11 = vpop.eup %1120 }
 0x199   :  { %v1123_v34 = vpop.eup %1122  ;;  %v514_v35 = vadd.f32 1.0, %v1121_v11 }
 0x19a   :  { %v1125_v12 = vpop.eup %1124  ;;  %v516_v36 = vadd.f32 1.0, %v1123_v34 }
 0x19b   :  { %v1127_v37 = vpop.eup %1126  ;;  %1128 = vrcp.f32 %v514_v35  ;;  %v515_v38 = vadd.f32 1.0, %v1125_v12 }
 0x19c   :  { %1130 = vrcp.f32 %v516_v36  ;;  %v517_v39 = vadd.f32 1.0, %v1127_v37 }
 0x19d   :  { %1132 = vrcp.f32 %v515_v38 }
 0x19e   :  { %1134 = vrcp.f32 %v517_v39 }
 0x1a8   :  { %v1129_v40 = vpop.eup %1128 }
 0x1a9   :  { %v1131_v41 = vpop.eup %1130  ;;  %v1600_v44 = vmul.f32 %v1129_v40, %v455_v50 }
 0x1aa   :  { %v1133_v45 = vpop.eup %1132  ;;  %v1602_v46 = vmul.f32 %v1131_v41, %v496_v62  ;;  %v531_v62 = vld [vmem:[%s1840_s5] sm:$0xff] }
 0x1ab   :  { %644 = vrot.lane.b32.xlu1 %v1600_v44, %s1215_s24  ;;  %v1608_v48 = vmul.f32 %v1133_v45, %v457_v13  ;;  %v1135_v57 = vpop.eup %1134 }
 0x1ac   :  { %648 = vrot.lane.b32.xlu0 %v1602_v46, %s1215_s24  ;;  %v1614_v50 = vmul.f32 %v1135_v57, %v498_v23 }
 0x1af   :  { %646 = vrot.lane.b32.xlu1 %v1608_v48, %s1215_s24 }
 0x1b0   :  { %612 = vrot.lane.b32.xlu0 %v1600_v44, %s1216_s28 }
 0x1b3   :  { %650 = vrot.lane.b32.xlu1 %v1614_v50, %s1215_s24 }
 0x1b4   :  { %616 = vrot.lane.b32.xlu0 %v1602_v46, %s1216_s28 }
 0x1b7   :  { %614 = vrot.lane.b32.xlu1 %v1608_v48, %s1216_s28 }
 0x1b8   :  { %628 = vrot.lane.b32.xlu0 %v1600_v44, %s1217_s29 }
 0x1bb   :  { %618 = vrot.lane.b32.xlu1 %v1614_v50, %s1216_s28 }
 0x1bc   :  { %632 = vrot.lane.b32.xlu0 %v1602_v46, %s1217_s29 }
 0x1bf   :  { %630 = vrot.lane.b32.xlu1 %v1608_v48, %s1217_s29 }
 0x1c0   :  { %596 = vrot.lane.b32.xlu0 %v1600_v44, %s1218_s30 }
 0x1c3   :  { %634 = vrot.lane.b32.xlu1 %v1614_v50, %s1217_s29 }
 0x1c4   :  { %600 = vrot.lane.b32.xlu0 %v1602_v46, %s1218_s30 }
 0x1c7   :  { %598 = vrot.lane.b32.xlu1 %v1608_v48, %s1218_s30 }
 0x1c8   :  { %564 = vrot.lane.b32.xlu0 %v1600_v44, %s1219_s11 }
 0x1cb   :  { %602 = vrot.lane.b32.xlu1 %v1614_v50, %s1218_s30 }
 0x1cc   :  { %568 = vrot.lane.b32.xlu0 %v1602_v46, %s1219_s11 }
 0x1cf   :  { %566 = vrot.lane.b32.xlu1 %v1608_v48, %s1219_s11 }
 0x1d0   :  { %580 = vrot.lane.b32.xlu0 %v1600_v44, %s1220_s12 }
 0x1d3   :  { %570 = vrot.lane.b32.xlu1 %v1614_v50, %s1219_s11 }
 0x1d4   :  { %584 = vrot.lane.b32.xlu0 %v1602_v46, %s1220_s12 }
 0x1d7   :  { %582 = vrot.lane.b32.xlu1 %v1608_v48, %s1220_s12 }
 0x1d8   :  { %532 = vrot.lane.b32.xlu0 %v1600_v44, %s1221_s13 }
 0x1db   :  { %586 = vrot.lane.b32.xlu1 %v1614_v50, %s1220_s12 }
 0x1dc   :  { %536 = vrot.lane.b32.xlu0 %v1602_v46, %s1221_s13 }
 0x1df   :  { %534 = vrot.lane.b32.xlu1 %v1608_v48, %s1221_s13 }
 0x1e0   :  { %548 = vrot.lane.b32.xlu0 %v1600_v44, %s1223_s14 }
 0x1e3   :  { %538 = vrot.lane.b32.xlu1 %v1614_v50, %s1221_s13 }
 0x1e4   :  { %552 = vrot.lane.b32.xlu0 %v1602_v46, %s1223_s14 }
 0x1e7   :  { %550 = vrot.lane.b32.xlu1 %v1608_v48, %s1223_s14 }
 0x1e8   :  { %682 = vperm.xlu0 %1118, %v531_v62  }
 0x1eb   :  { %554 = vrot.lane.b32.xlu1 %v1614_v50, %s1223_s14 }
 0x21d   :  { %v645_v63 = vpop.permute.xlu1 %644 }
 0x21e   :  { %v649_v5 = vpop.permute.xlu0 %648 }
 0x221   :  { %v647_v13 = vpop.permute.xlu1 %646 }
 0x222   :  { %v653_v21 = vsel %vm346_vm0, %v647_v13, %v649_v5  ;;  %v654_v22 = vsel %vm346_vm0, %v645_v63, %v647_v13  ;;  %v613_v23 = vpop.permute.xlu0 %612 }
 0x223   :  { %v656_v25 = vmul.f32 %v654_v22, %v1390_v17  ;;  %v657_v27 = vmul.f32 %v653_v21, %v1393_v18 }
 0x225   :  { %v676_v29 = vpack.c.bf16 %v656_v25, %v656_v25  ;;  %v677_v32 = vpack.c.bf16 %v657_v27, %v657_v27  ;;  %v651_v33 = vpop.permute.xlu1 %650 }
 0x226   :  { %v652_v4 = vsel %vm346_vm0, %v649_v5, %v651_v33  ;;  %v655_v11 = vsel %vm346_vm0, %v651_v33, %v645_v63  ;;  %v617_v34 = vpop.permute.xlu0 %616 }
 0x227   :  { %v658_v35 = vmul.f32 %v652_v4, %v1387_v16  ;;  %v659_v12 = vmul.f32 %v655_v11, %v1396_v19  ;;  %1090 = vmatprep.subr.msk.bf16.mxu0 %vm407_vm1, %v677_v32  ;;  %v689_v17 = vsel %vm407_vm1, %v676_v29, 0 }
 0x228   :  { %707 = vmatpush1.bf16.msra.mxu0 %v689_v17 }
 0x229   :  { %v678_v18 = vpack.c.bf16 %v658_v35, %v658_v35  ;;  %v679_v36 = vpack.c.bf16 %v659_v12, %v659_v12  ;;  %v615_v37 = vpop.permute.xlu1 %614 }
 0x22a   :  { %v629_v38 = vpop.permute.xlu0 %628  ;;  %v621_v16 = vsel %vm266_vm3, %v615_v37, %v617_v34  ;;  %v622_v19 = vsel %vm266_vm3, %v613_v23, %v615_v37 }
 0x22b   :  { %1092 = vmatprep.subr.msk.bf16.mxu1 %vm407_vm1, %v679_v36  ;;  %v695_v39 = vsel %vm407_vm1, %v678_v18, 0  ;;  %v624_v5 = vmul.f32 %v622_v19, %v1444_v54  ;;  %v625_v13 = vmul.f32 %v621_v16, %v1420_v43 }
 0x22c   :  { %748 = vmatpush1.bf16.msra.mxu1 %v695_v39 }
 0x22d   :  { %v619_v40 = vpop.permute.xlu1 %618 }
 0x22e   :  { %v633_v41 = vpop.permute.xlu0 %632  ;;  %v620_v25 = vsel %vm266_vm3, %v617_v34, %v619_v40  ;;  %v623_v27 = vsel %vm266_vm3, %v619_v40, %v613_v23 }
 0x231   :  { %v631_v45 = vpop.permute.xlu1 %630 }
 0x232   :  { %v637_v57 = vsel %vm306_vm2, %v631_v45, %v633_v41  ;;  %v638_v62 = vsel %vm306_vm2, %v629_v38, %v631_v45  ;;  %v597_v63 = vpop.permute.xlu0 %596 }
 0x233   :  { %v640_v21 = vmul.f32 %v638_v62, %v1430_v49  ;;  %v641_v22 = vmul.f32 %v637_v57, %v1438_v52  ;;  %v626_v49 = vmul.f32 %v620_v25, %v1425_v47  ;;  %v627_v52 = vmul.f32 %v623_v27, %v1417_v42 }
 0x235   :  { %v672_v29 = vpack.c.bf16 %v640_v21, %v624_v5  ;;  %v635_v32 = vpop.permute.xlu1 %634  ;;  %v673_v33 = vpack.c.bf16 %v641_v22, %v625_v13 }
 0x236   :  { %v636_v4 = vsel %vm306_vm2, %v633_v41, %v635_v32  ;;  %v639_v54 = vsel %vm306_vm2, %v635_v32, %v629_v38  ;;  %v601_v43 = vpop.permute.xlu0 %600 }
 0x237   :  { %v642_v11 = vmul.f32 %v636_v4, %v1441_v53  ;;  %v643_v34 = vmul.f32 %v639_v54, %v1435_v51  ;;  %708 = vmatprep.subr.bf16.mxu0 %v673_v33 }
 0x238   :  { %709 = vmatpush1.bf16.msra.mxu0 %v672_v29 }
 0x239   :  { %v674_v23 = vpack.c.bf16 %v642_v11, %v626_v49  ;;  %v599_v35 = vpop.permute.xlu1 %598  ;;  %v675_v12 = vpack.c.bf16 %v643_v34, %v627_v52 }
 0x23a   :  { %v605_v17 = vsel %vm226_vm4, %v599_v35, %v601_v43  ;;  %v606_v18 = vsel %vm226_vm4, %v597_v63, %v599_v35  ;;  %v565_v36 = vpop.permute.xlu0 %564 }
 0x23b   :  { %v608_v47 = vmul.f32 %v606_v18, %v1466_v26  ;;  %v609_v42 = vmul.f32 %v605_v17, %v1474_v30  ;;  %749 = vmatprep.subr.bf16.mxu1 %v675_v12 }
 0x23c   :  { %750 = vmatpush1.bf16.msra.mxu1 %v674_v23 }
 0x23d   :  { %v668_v51 = vpack.c.bf16 %v608_v47, %v1600_v44  ;;  %v603_v53 = vpop.permute.xlu1 %602  ;;  %v669_v37 = vpack.c.bf16 %v609_v42, %v1608_v48 }
 0x23e   :  { %v604_v38 = vsel %vm226_vm4, %v601_v43, %v603_v53  ;;  %v607_v39 = vsel %vm226_vm4, %v603_v53, %v597_v63  ;;  %v569_v40 = vpop.permute.xlu0 %568 }
 0x23f   :  { %v610_v41 = vmul.f32 %v604_v38, %v1477_v31  ;;  %v611_v26 = vmul.f32 %v607_v39, %v1469_v28  ;;  %710 = vmatprep.subr.bf16.mxu0 %v669_v37 }
 0x240   :  { %711 = vmatpush1.bf16.msra.mxu0 %v668_v51 }
 0x241   :  { %v670_v30 = vpack.c.bf16 %v610_v41, %v1602_v46  ;;  %v567_v16 = vpop.permute.xlu1 %566  ;;  %v671_v44 = vpack.c.bf16 %v611_v26, %v1614_v50 }
 0x242   :  { %v581_v19 = vpop.permute.xlu0 %580  ;;  %v574_v57 = vsel %vm146_vm5, %v565_v36, %v567_v16  ;;  %v573_v21 = vsel %vm146_vm5, %v567_v16, %v569_v40 }
 0x243   :  { %751 = vmatprep.subr.bf16.mxu1 %v671_v44  ;;  %v577_v63 = vmul.f32 %v574_v57, %v1495_v59  ;;  %v578_v43 = vmul.f32 %v573_v21, %v1507_v3 }
 0x244   :  { %752 = vmatpush1.bf16.msra.mxu1 %v670_v30 }
 0x245   :  { %v571_v48 = vpop.permute.xlu1 %570 }
 0x246   :  { %v585_v45 = vpop.permute.xlu0 %584  ;;  %v572_v5 = vsel %vm146_vm5, %v569_v40, %v571_v48  ;;  %v575_v13 = vsel %vm146_vm5, %v571_v48, %v565_v36 }
 0x247   :  { %v576_v32 = vmul.f32 %v575_v13, %v1504_v1  ;;  %v579_v33 = vmul.f32 %v572_v5, %v1510_v60 }
 0x249   :  { %v583_v62 = vpop.permute.xlu1 %582 }
 0x24a   :  { %v590_v31 = vsel %vm186_vm6, %v581_v19, %v583_v62  ;;  %v533_v28 = vpop.permute.xlu0 %532  ;;  %v589_v46 = vsel %vm186_vm6, %v583_v62, %v585_v45 }
 0x24b   :  { %v593_v50 = vmul.f32 %v590_v31, %v1499_v2  ;;  %v594_v27 = vmul.f32 %v589_v46, %v1520_v7 }
 0x24d   :  { %v587_v22 = vpop.permute.xlu1 %586  ;;  %v665_v25 = vpack.c.bf16 %v593_v50, %v577_v63  ;;  %v666_v11 = vpack.c.bf16 %v594_v27, %v578_v43 }
 0x24e   :  { %v588_v59 = vsel %vm186_vm6, %v585_v45, %v587_v22  ;;  %v591_v29 = vsel %vm186_vm6, %v587_v22, %v581_v19  ;;  %v537_v2 = vpop.permute.xlu0 %536 }
 0x24f   :  { %v592_v4 = vmul.f32 %v591_v29, %v1517_v6  ;;  %v595_v54 = vmul.f32 %v588_v59, %v1527_v20  ;;  %712 = vmatprep.subr.bf16.mxu0 %v665_v25 }
 0x251   :  { %v664_v49 = vpack.c.bf16 %v592_v4, %v576_v32  ;;  %v535_v7 = vpop.permute.xlu1 %534  ;;  %v667_v52 = vpack.c.bf16 %v595_v54, %v579_v33 }
 0x252   :  { %v549_v34 = vpop.permute.xlu0 %548  ;;  %v542_v1 = vsel %vm67_vm7, %v533_v28, %v535_v7  ;;  %v541_v36 = vsel %vm67_vm7, %v535_v7, %v537_v2  ;;  %v810_v7 = vld [vmem:[%s1841_s6] sm:$0x3] }
 0x253   :  { %713 = vmatpush1.bf16.msra.mxu0 %v664_v49  ;;  %753 = vmatprep.subr.bf16.mxu1 %v667_v52  ;;  %v545_v20 = vmul.f32 %v542_v1, %v1545_v55  ;;  %v546_v40 = vmul.f32 %v541_v36, %v1557_v0 }
 0x254   :  { %754 = vmatpush1.bf16.msra.mxu1 %v666_v11 }
 0x255   :  { %v539_v23 = vpop.permute.xlu1 %538 }
 0x256   :  { %v553_v35 = vpop.permute.xlu0 %552  ;;  %v540_v17 = vsel %vm67_vm7, %v537_v2, %v539_v23  ;;  %v543_v18 = vsel %vm67_vm7, %v539_v23, %v533_v28 }
 0x257   :  { %v547_v37 = vmul.f32 %v540_v17, %v1560_v61  ;;  %v958_v17 = vld [vmem:[%s1842_s7] sm:$0x3] }
 0x259   :  { %v551_v60 = vpop.permute.xlu1 %550 }
 0x25a   :  { %v558_v6 = vsel %vm106_vm8, %v549_v34, %v551_v60  ;;  %v557_v3 = vsel %vm106_vm8, %v551_v60, %v553_v35 }
 0x25b   :  { %v561_v12 = vmul.f32 %v558_v6, %v1549_v56  ;;  %v562_v51 = vmul.f32 %v557_v3, %v1570_v15  ;;  %v544_v56 = vmul.f32 %v543_v18, %v1554_v58  ;;  %v1224_v58 = vmov 0.0  }
 0x25d   :  { %v555_v47 = vpop.permute.xlu1 %554  ;;  %v661_v42 = vpack.c.bf16 %v561_v12, %v545_v20  ;;  %v662_v15 = vpack.c.bf16 %v562_v51, %v546_v40 }
 0x25e   :  { %v556_v55 = vsel %vm106_vm8, %v553_v35, %v555_v47  ;;  %v559_v53 = vsel %vm106_vm8, %v555_v47, %v549_v34 }
 0x25f   :  { %v560_v38 = vmul.f32 %v559_v53, %v1567_v14  ;;  %v563_v39 = vmul.f32 %v556_v55, %v1577_v24  ;;  %714 = vmatprep.subr.bf16.mxu0 %v661_v42 }
 0x261   :  { %v660_v41 = vpack.c.bf16 %v560_v38, %v544_v56  ;;  %v663_v26 = vpack.c.bf16 %v563_v39, %v547_v37 }
 0x263   :  { %715 = vmatpush1.bf16.msra.mxu0 %v660_v41  ;;  %755 = vmatprep.subr.bf16.mxu1 %v663_v26  ;;  %v683_v61 = vpop.permute.xlu0 %682 }
 0x264   :  { %756 = vmatpush1.bf16.msra.mxu1 %v662_v15 }
 0x266   :  { %1091 = vmatmul.mubr.msk.bf16.vlgmr.msra.gmra.mxu0 %vm403_vm9, %v530_v8 }
 0x267   :  { %1093 = vmatmul.mubr.msk.bf16.vlgmr.msra.gmra.mxu1 %vm403_vm9, %v530_v8  ;;  %879 = vmatprep.mubr.f32.mxu0 %v1224_v58 }
 0x268   :  { %950 = vmatprep.mubr.f32.mxu1 %v1224_v58 }
 0x326   :  { %v734_v14 = vpop.f32.mrf.mxu0 }
 0x327   :  { %v735_v0 = vadd.f32 %v734_v14, %v683_v61  ;;  %v775_v24 = vpop.f32.mrf.mxu1  ;;  %v957_v14 = vld [vmem:[%s1843_s8] sm:$0xff] }
 0x328   :  { %v776_v30 = vadd.f32 %v775_v24, %v683_v61  ;;  %v736_v16 = vpop.f32.mrf.mxu0 }
 0x329   :  { %v1094_v44 = vmul.f32 -1.442695, %v735_v0  ;;  %v737_v19 = vadd.f32 %v736_v16, %v683_v61  ;;  %v777_v48 = vpop.f32.mrf.mxu1 }
 0x32a   :  { %v1096_v45 = vmul.f32 -1.442695, %v776_v30  ;;  %v778_v57 = vadd.f32 %v777_v48, %v683_v61  ;;  %v738_v62 = vpop.f32.mrf.mxu0  ;;  %v959_v48 = vld [vmem:[%s1844_s9] sm:$0xff] }
 0x32b   :  { %1136 = vpow2.f32 %v1094_v44  ;;  %v1095_v31 = vmul.f32 -1.442695, %v737_v19  ;;  %v779_v28 = vpop.f32.mrf.mxu1 }
 0x32c   :  { %1138 = vpow2.f32 %v1096_v45  ;;  %v1097_v63 = vmul.f32 -1.442695, %v778_v57  ;;  %v739_v46 = vpop.f32.mrf.mxu0 }
 0x32d   :  { %1140 = vpow2.f32 %v1095_v31  ;;  %v780_v50 = vpop.f32.mrf.mxu1 }
 0x32e   :  { %1142 = vpow2.f32 %v1097_v63 }
 0x338   :  { %v1137_v5 = vpop.eup %1136 }
 0x339   :  { %v1139_v13 = vpop.eup %1138  ;;  %v794_v21 = vadd.f32 1.0, %v1137_v5 }
 0x33a   :  { %v1141_v22 = vpop.eup %1140  ;;  %v796_v25 = vadd.f32 1.0, %v1139_v13 }
 0x33b   :  { %v1143_v27 = vpop.eup %1142  ;;  %1144 = vrcp.f32 %v794_v21  ;;  %v795_v59 = vadd.f32 1.0, %v1141_v22 }
 0x33c   :  { %1146 = vrcp.f32 %v796_v25  ;;  %v797_v29 = vadd.f32 1.0, %v1143_v27 }
 0x33d   :  { %1148 = vrcp.f32 %v795_v59  ;;  %v1001_v59 = vld [vmem:[%s1835_s0] sm:$0xff] }
 0x33e   :  { %1150 = vrcp.f32 %v797_v29  ;;  %v1002_v29 = vld [vmem:[%s1835_s0 + $0x8] sm:$0xff] }
 0x348   :  { %v1145_v2 = vpop.eup %1144 }
 0x349   :  { %v1147_v32 = vpop.eup %1146  ;;  %v1786_v43 = vmul.f32 %v1145_v2, %v735_v0 }
 0x34a   :  { %v1149_v33 = vpop.eup %1148  ;;  %v1793_v52 = vmul.f32 %v1147_v32, %v776_v30 }
 0x34b   :  { %v1151_v4 = vpop.eup %1150  ;;  %v1784_v54 = vmul.f32 %v1149_v33, %v737_v19 }
 0x34c   :  { %v1788_v49 = vmul.f32 %v1151_v4, %v778_v57  ;;  %v1054_v4 = vld [vmem:[%s1835_s0 + $0x10] sm:$0xff] }
 0x34d   :  { %845 = vmatprep.subr.mxu0 %v1784_v54 }
 0x34e   :  { %846 = vmatpush1.msra.mxu0 %v1786_v43  ;;  %916 = vmatprep.subr.mxu1 %v1788_v49 }
 0x34f   :  { %1098 = vmatmul.mubr.msk.f32.vlgmr.msra.gmra.mxu0 %vm811_vm10, %v810_v7  ;;  %917 = vmatpush1.msra.mxu1 %v1793_v52 }
 0x350   :  { %1099 = vmatmul.mubr.msk.f32.vlgmr.msra.gmra.mxu1 %vm811_vm10, %v810_v7  ;;  %v1055_v7 = vld [vmem:[%s1835_s0 + $0x18] sm:$0xff] }
 0x40f   :  { %v881_v11 = vpop.f32.mrf.mxu0 }
 0x410   :  { %v961_v34 = vsel %vm960_vm11, %v881_v11, 0.0  ;;  %v952_v23 = vpop.f32.mrf.mxu1 }
 0x411   :  { %v883_v1 = vpop.f32.mrf.mxu0  ;;  %v1014_v6 = vsel %vm960_vm11, %v952_v23, 0.0 }
 0x412   :  { %v962_v60 = vsel %vm960_vm11, %v883_v1, 0.0  ;;  %v954_v35 = vpop.f32.mrf.mxu1 }
 0x413   :  { %v1015_v20 = vsel %vm960_vm11, %v954_v35, 0.0  ;;  %v963_v3 = vadd.f32 %v962_v60, %v961_v34 }
 0x414   :  { %v1016_v12 = vadd.f32 %v1015_v20, %v1014_v6 }
 0x415   :  { %964 = vadd.xlane.f32.xlu1 %v963_v3 }
 0x416   :  { %1017 = vadd.xlane.f32.xlu0 %v1016_v12 }
 0x49e   :  { %v965_v18 = vpop.xlane.xlu1 %964 }
 0x49f   :  { %v966_v36 = vmul.f32 0.00390625, %v965_v18  ;;  %v1018_v47 = vpop.xlane.xlu0 %1017 }
 0x4a0   :  { %v1019_v42 = vmul.f32 0.00390625, %v1018_v47 }
 0x4a1   :  { %v967_v51 = vadd.f32 %v966_v36, %v958_v17 }
 0x4a2   :  { %v1020_v55 = vadd.f32 %v1019_v42, %v958_v17 }
 0x4a3   :  { %v1100_v53 = vmul.f32 -1.442695, %v967_v51 }
 0x4a4   :  { %v1102_v56 = vmul.f32 -1.442695, %v1020_v55 }
 0x4a5   :  { %1152 = vpow2.f32 %v1100_v53 }
 0x4a6   :  { %1154 = vpow2.f32 %v1102_v56 }
 0x4b2   :  { %v1153_v37 = vpop.eup %1152 }
 0x4b3   :  { %v1155_v38 = vpop.eup %1154  ;;  %v971_v39 = vadd.f32 1.0, %v1153_v37 }
 0x4b4   :  { %v1024_v40 = vadd.f32 1.0, %v1155_v38 }
 0x4b5   :  { %1156 = vrcp.f32 %v971_v39 }
 0x4b6   :  { %1158 = vrcp.f32 %v1024_v40 }
 0x4c2   :  { %v1157_v41 = vpop.eup %1156 }
 0x4c3   :  { %v1159_v26 = vpop.eup %1158  ;;  %v974_v15 = vmul.f32 %v1157_v41, %v967_v51 }
 0x4c4   :  { %v1027_v8 = vmul.f32 %v1159_v26, %v1020_v55 }
 0x4c5   :  { %v984_v58 = vrot.slane %v974_v15, %v1379_v10  ;;  %v978_v44 = vrot.slane %v974_v15, %v1377_v9 }
 0x4c6   :  { %v1037_v61 = vrot.slane %v1027_v8, %v1379_v10  ;;  %v1031_v10 = vrot.slane %v1027_v8, %v1377_v9 }
 0x4c7   :  { %986 = vrot.lane.b32.xlu0 %v984_v58, %s1220_s12  ;;  %v979_v19 = vmul.f32 %v978_v44, %v957_v14 }
 0x4c8   :  { %1039 = vrot.lane.b32.xlu1 %v1037_v61, %s1220_s12  ;;  %v1032_v45 = vmul.f32 %v1031_v10, %v957_v14 }
 0x4c9   :  { %v980_v57 = vadd.f32 %v979_v19, %v959_v48 }
 0x4ca   :  { %v1033_v31 = vadd.f32 %v1032_v45, %v959_v48 }
 0x539   :  { %v987_v0 = vpop.permute.xlu0 %986 }
 0x53a   :  { %v989_v24 = vmul.f32 %v987_v0, %v957_v14  ;;  %v1040_v30 = vpop.permute.xlu1 %1039 }
 0x53b   :  { %v1042_v16 = vmul.f32 %v1040_v30, %v957_v14 }
 0x53c   :  { %991 = vrot.lane.b32.xlu1 %v989_v24, %s1218_s30 }
 0x53d   :  { %1044 = vrot.lane.b32.xlu0 %v1042_v16, %s1218_s30  ;;  %s1225_s30 = smov [#allocation5]  }
 0x53e   :  { %s1073_s11 = sshll.u32 %s1225_s30, 4  ;;  %s1074_s11 = int_to_ptr.vmem [resolvable:$true] %s1073_s11 }
 0x53f   :  { %s1188_s12 = scalar_lea.vmem %s1074_s11, 512  ;;  %p1193_p6 = scmp.lt.s32.totalorder %s1074_s11, %s1074_s11 }
 0x540   :  { %p1189_p5 = scmp.ne.s32.totalorder %s1074_s11, %s1188_s12  ;;  %p1194_p7 = scmp.lt.s32.totalorder %s1188_s12, %s1188_s12 }
 0x542   :  { %p1195_p8 = por %p1194_p7, %p1193_p6 }
 0x544   :  { %p1196_p9 = pnand %p1195_p8, %p1189_p5 }
 0x5ae   :  { %v992_v62 = vpop.permute.xlu1 %991 }
 0x5af   :  { %v994_v28 = vadd.f32 %v992_v62, %v980_v57  ;;  %v1045_v63 = vpop.permute.xlu0 %1044 }
 0x5b0   :  { %v1047_v46 = vadd.f32 %v1045_v63, %v1033_v31 }
 0x5b1   :  { %v1101_v50 = vmul.f32 -1.442695, %v994_v28 }
 0x5b2   :  { %v1103_v5 = vmul.f32 -1.442695, %v1047_v46 }
 0x5b3   :  { %1160 = vpow2.f32 %v1101_v50 }
 0x5b4   :  { %1162 = vpow2.f32 %v1103_v5 }
 0x5c0   :  { %v1161_v13 = vpop.eup %1160 }
 0x5c1   :  { %v1163_v21 = vpop.eup %1162  ;;  %v998_v22 = vadd.f32 1.0, %v1161_v13 }
 0x5c2   :  { %v1051_v9 = vadd.f32 1.0, %v1163_v21 }
 0x5c3   :  { %1164 = vrcp.f32 %v998_v22 }
 0x5c4   :  { %1166 = vrcp.f32 %v1051_v9 }
 0x5d0   :  { %v1165_v25 = vpop.eup %1164 }
 0x5d1   :  { %v1167_v27 = vpop.eup %1166  ;;  %1005 = vperm.xlu1 %1119, %v1165_v25  }
 0x5d2   :  { %1058 = vperm.xlu0 %1118, %v1167_v27  }
 0x64c   :  { %v1006_v2 = vpop.permute.xlu1 %1005 }
 0x64d   :  { %v1008_v32 = vmul.f32 %v1006_v2, %v1786_v43  ;;  %v1009_v33 = vmul.f32 %v1006_v2, %v1784_v54  ;;  %v1059_v11 = vpop.permute.xlu0 %1058 }
 0x64e   :  { %v1061_v34 = vmul.f32 %v1059_v11, %v1793_v52  ;;  %v1062_v23 = vmul.f32 %v1059_v11, %v1788_v49 }
 0x64f   :  { %v1010_v1 = vadd.f32 %v1008_v32, %v1001_v59  ;;  %v1011_v60 = vadd.f32 %v1009_v33, %v1002_v29 }
 0x650   :  { %v1063_v43 = vadd.f32 %v1061_v34, %v1054_v4  ;;  %v1064_v35 = vadd.f32 %v1062_v23, %v1055_v7 }
 0x651   :  { %1012 = vst [vmem:[#allocation5] sm:$0xff] %v1010_v1  ;;  %1013 = vst [vmem:[#allocation5 + $0x8] sm:$0xff] %v1011_v60 }
 0x652   :  { %1065 = vst [vmem:[#allocation5 + $0x10] sm:$0xff] %v1063_v43  ;;  %1066 = vst [vmem:[#allocation5 + $0x18] sm:$0xff] %v1064_v35 }
 0x653   :  { %1199 = shalt.err (!%p1196_p9)
}
 0x654   :  { %1076 = dma.vmem_to_hbm [thread:$0]  %s1074_s11, 512, %s1845_s10, [#allocation4]  }
 0x655   :  { %1210 = dma.done.wait [#allocation4], 512  }
 0x656   :  { %1211 = vsyncadd [#allocation4], 4294966784 }
 0x657   :  { %1080 = vsyncpa [#allocation3], 1 }
 0x658   :  { %1081 = vsyncpa [#allocation4], 1 }

</bundles_post_ra>
